<compile_context>
chip_gen: v7x
topology: tpu7x:2x2x1
jax: 0.10.0
libtpu: 0.0.40
codegen_flags: <defaults>
</compile_context>

<pallas_src>
import functools

import jax
import jax.numpy as jnp
import numpy as np
from jax.experimental import pallas as pl
from jax.experimental.pallas import tpu as pltpu

# ---------------- config (small but consistent with the module) ----------------
KERNEL_SIZES = (2, 3, 4, 5)
KMAX = max(KERNEL_SIZES)
KERNEL_NUM = 32          # kernel_num
EMBED_DIM = 128          # embed_dim
CLASS_NUM = 2            # class_num
VOCAB = 100              # len(dataset.vocabulary_set)
PAD_IDX = 0              # dataset.voc_to_index['<UNK>']
SEQ_LEN = 16             # text length
SKILL_LEN = 8            # skill length
BATCH = 2

LANE = 128
CONV_LANES = len(KERNEL_SIZES) * KERNEL_NUM   # 4 * 32 = 128 (full vreg lane width)


def _round_up(x, m):
    return (x + m - 1) // m * m


# ------------------------------- Pallas kernel ---------------------------------
def _textcnn_kernel(x_ref, skill_ref, w_ref, mask_ref, bias_ref, out_ref,
                    *, block_b, lp, skill_len, embed_dim):
    E = embed_dim

    # x_ref: (block_b * lp, E) bf16 -- block_b sequences stacked along M, each padded
    # to lp rows (lp % 8 == 0, >= KMAX-1 zero rows between consecutive sequences).
    x = x_ref[...]

    def shift_up(a, k):
        # a shifted up by k rows, exact zero rows appended past the end (rows past the
        # end either hit zero pad rows or zero-padded conv taps, so this is exact).
        return jnp.concatenate(
            [a[k:, :], jnp.zeros((k, a.shape[1]), a.dtype)], axis=0)

    x1 = shift_up(x, 1)
    x2 = shift_up(x, 2)
    x3 = shift_up(x, 3)
    x4 = shift_up(x, 4)

    # Fold conv taps into the MXU K dimension: two K=2E matmuls + one K=E matmul.
    y01 = jnp.concatenate([x, x1], axis=1)          # (M, 2E) bf16
    y23 = jnp.concatenate([x2, x3], axis=1)         # (M, 2E) bf16

    w01 = w_ref[0:2 * E, :]                          # taps (0,1)   (2E, 128) bf16
    w23 = w_ref[2 * E:4 * E, :]                      # taps (2,3)   (2E, 128) bf16
    w4 = w_ref[4 * E:5 * E, :]                       # tap 4        (E, 128)  bf16
    fcw = w_ref[5 * E:5 * E + CONV_LANES + E, :]     # fused FC     (2E, 128) bf16

    acc = jnp.dot(y01, w01, preferred_element_type=jnp.float32)
    acc = acc + jnp.dot(y23, w23, preferred_element_type=jnp.float32)
    acc = acc + jnp.dot(x4, w4, preferred_element_type=jnp.float32)   # (M, 128) f32

    # Vectorized masked max-pool over time.  mask_ref is (lp, 128) with 0 on valid
    # positions (t <= L - K_i for that 32-lane segment) and -1e30 elsewhere (this also
    # covers the inter-sequence zero-pad rows).
    maskb = mask_ref[...]                                        # (lp, 128) f32
    acc3 = acc.reshape(block_b, lp, CONV_LANES)                  # layout-preserving
    pooled = jnp.max(acc3 + maskb[None, :, :], axis=1)           # (block_b, 128) f32

    biases = bias_ref[...]                                       # (8, 128) f32
    cbias = biases[0:1, :]
    fcb = biases[1:2, :]
    # Bias + ReLU after the pool (exact: bias time-invariant, ReLU monotone).
    pooled = jnp.maximum(pooled + cbias, 0.0)

    # skill_mean: f32 sublane mean over Ls rows per batch element.
    sk = skill_ref[...].astype(jnp.float32).reshape(block_b, skill_len, E)
    skill_mean = jnp.sum(sk, axis=1) * (1.0 / skill_len)         # (block_b, E) f32

    # Fused lane-dense FC: one K=256 matmul; class dim is zero-padded to 128 lanes so
    # the output store is a full-lane unmasked vst.
    feat = jnp.concatenate([pooled, skill_mean], axis=1).astype(jnp.bfloat16)
    logits = fcb + jnp.dot(feat, fcw, preferred_element_type=jnp.float32)
    out_ref[...] = logits


# --------------------------------- wrapper --------------------------------------
def textcnn_forward(x_ids, skill_ids, params, *, block_b=None):
    # bf16 embedding gather (halves gather bytes vs. f32).
    embed = params["embed"].astype(jnp.bfloat16)                  # (V, E) bf16
    x_emb = jnp.take(embed, x_ids, axis=0)                        # (B, L, E)
    skill_emb = jnp.take(embed, skill_ids, axis=0)                # (B, Ls, E)

    B, L, E = x_emb.shape
    Ls = skill_emb.shape[1]
    KN = KERNEL_NUM
    C = CLASS_NUM

    if block_b is None:
        # Large batch blocks amortize per-grid-step overhead; 128 keeps VMEM use to a
        # few MiB (safe within v5e's 16 MiB scoped-VMEM default and v7x's 64 MiB/TC).
        block_b = B if B <= 128 else 128
    b_pad = _round_up(B, block_b)
    grid_n = b_pad // block_b
    if grid_n > 1:
        assert block_b % 8 == 0, "block_b must be a multiple of 8 when gridding batch"
    lp = _round_up(L + KMAX - 1, 8)                               # per-seq stride along M

    # --- activations: pad time to lp and batch to b_pad, flatten (already bf16) ---
    x_flat = jnp.pad(x_emb, ((0, b_pad - B), (0, lp - L), (0, 0))
                     ).reshape(b_pad * lp, E)
    s_flat = jnp.pad(skill_emb, ((0, b_pad - B), (0, 0), (0, 0))
                     ).reshape(b_pad * Ls, E)

    # --- packed weight slab: [W01 | W23 | W4 | FC] along rows, bf16, 128 lanes ---
    wf = jnp.zeros((KMAX, E, CONV_LANES), jnp.float32)            # zero-padded taps
    for i, K in enumerate(KERNEL_SIZES):
        wf = wf.at[:K, :, i * KN:(i + 1) * KN].set(params[f"conv_w{K}"])
    fcw = jnp.zeros((CONV_LANES + E, LANE), jnp.float32)
    fcw = fcw.at[:, :C].set(params["fc_w"])
    wslab = jnp.concatenate(
        [wf[0], wf[1], wf[2], wf[3], wf[4], fcw], axis=0).astype(jnp.bfloat16)

    # --- packed biases: row 0 = conv bias (4*KN lanes), row 1 = fc bias (C lanes) ---
    cbias = jnp.concatenate([params[f"conv_b{K}"] for K in KERNEL_SIZES], axis=1)
    biases = jnp.zeros((8, LANE), jnp.float32)
    biases = biases.at[0, :CONV_LANES].set(cbias[0])
    biases = biases.at[1, :C].set(params["fc_b"][0])

    # --- pooling validity mask over the full per-seq stride (covers pad rows too) ---
    t = np.arange(lp)[:, None]
    limit = np.repeat(np.array([L - K for K in KERNEL_SIZES], np.int32), KN)[None, :]
    maskb = jnp.asarray(np.where(t <= limit, 0.0, -1e30).astype(np.float32))  # (lp,128)

    in_specs = [
        pl.BlockSpec((block_b * lp, E), lambda g: (g, 0)),        # stacked sequences
        pl.BlockSpec((block_b * Ls, E), lambda g: (g, 0)),        # stacked skills
        pl.BlockSpec(wslab.shape, lambda g: (0, 0)),              # packed weights
        pl.BlockSpec(maskb.shape, lambda g: (0, 0)),              # pooling mask
        pl.BlockSpec(biases.shape, lambda g: (0, 0)),             # packed biases
    ]

    M = block_b * lp
    flops = grid_n * (2 * M * (2 * E) * LANE * 2          # two K=2E conv matmuls
                      + 2 * M * E * LANE                  # one K=E conv matmul
                      + 2 * block_b * (CONV_LANES + E) * LANE)    # fused FC
    bytes_accessed = ((x_flat.size + s_flat.size + wslab.size) * 2
                      + (maskb.size + biases.size + b_pad * LANE) * 4)
    cost = pl.CostEstimate(flops=flops, transcendentals=0,
                           bytes_accessed=bytes_accessed)

    out = pl.pallas_call(
        functools.partial(_textcnn_kernel, block_b=block_b, lp=lp,
                          skill_len=Ls, embed_dim=E),
        out_shape=jax.ShapeDtypeStruct((b_pad, LANE), jnp.float32),
        grid_spec=pltpu.PrefetchScalarGridSpec(
            num_scalar_prefetch=0,
            grid=(grid_n,),
            in_specs=in_specs,
            out_specs=pl.BlockSpec((block_b, LANE), lambda g: (g, 0)),
        ),
        compiler_params=pltpu.CompilerParams(
            dimension_semantics=("parallel",)),   # lets v7x spread batch blocks on 2 TCs
        cost_estimate=cost,
    )(x_flat, s_flat, wslab, maskb, biases)

    # Dropout is identity at inference; slice off batch / class-lane padding.
    return out[:B, :C]


# ---------------------------- pure-JAX reference ---------------------------------
def reference_forward(x_ids, skill_ids, params):
    embed = params["embed"]
    x_emb = jnp.take(embed, x_ids, axis=0)                        # (B, L, E)
    skill_emb = jnp.take(embed, skill_ids, axis=0)                # (B, Ls, E)
    B, L, E = x_emb.shape
    pooled = []
    for K in KERNEL_SIZES:
        w = params[f"conv_w{K}"]                                  # (K, E, kn)
        b = params[f"conv_b{K}"]                                  # (1, kn)
        T = L - K + 1
        acc = jnp.zeros((B, T, KERNEL_NUM), jnp.float32)
        for k in range(K):
            acc = acc + jnp.einsum("ble,ek->blk", x_emb[:, k:k + T, :], w[k])
        conv = jax.nn.relu(acc + b[None])
        pooled.append(jnp.max(conv, axis=1))                      # (B, kn)
    skill_mean = jnp.mean(skill_emb, axis=1)                      # (B, E)
    feat = jnp.concatenate(pooled + [skill_mean], axis=1)         # (B, 4*kn+E)
    return feat @ params["fc_w"] + params["fc_b"]                 # (B, C)


# ----------------------------------- main ----------------------------------------
def make_params(key):
    ks = jax.random.split(key, 12)
    params = {}
    embed = 0.1 * jax.random.normal(ks[0], (VOCAB, EMBED_DIM), jnp.float32)
    embed = embed.at[PAD_IDX].set(0.0)                            # padding_idx row
    params["embed"] = embed
    for i, K in enumerate(KERNEL_SIZES):
        params[f"conv_w{K}"] = 0.1 * jax.random.normal(
            ks[1 + i], (K, EMBED_DIM, KERNEL_NUM), jnp.float32)
        params[f"conv_b{K}"] = 0.1 * jax.random.normal(
            ks[5 + i], (1, KERNEL_NUM), jnp.float32)
    f_in = len(KERNEL_SIZES) * KERNEL_NUM + EMBED_DIM
    params["fc_w"] = 0.1 * jax.random.normal(ks[9], (f_in, CLASS_NUM), jnp.float32)
    params["fc_b"] = 0.1 * jax.random.normal(ks[10], (1, CLASS_NUM), jnp.float32)
    return params


if __name__ == "__main__":
    key = jax.random.PRNGKey(0)
    kp, kx, ks = jax.random.split(key, 3)
    params = make_params(kp)

    x_ids = jax.random.randint(kx, (BATCH, SEQ_LEN), 0, VOCAB, dtype=jnp.int32)
    skill_ids = jax.random.randint(ks, (BATCH, SKILL_LEN), 0, VOCAB, dtype=jnp.int32)

    logits = jax.block_until_ready(textcnn_forward(x_ids, skill_ids, params))
    ref = jax.block_until_ready(reference_forward(x_ids, skill_ids, params))

    # bf16 MXU operands / bf16 gathered embeddings vs. the f32 reference -> relaxed tol.
    np.testing.assert_allclose(np.asarray(logits), np.asarray(ref),
                               rtol=5e-2, atol=5e-2)
    assert logits.shape == (BATCH, CLASS_NUM)
    print("KERNEL_OK")
</pallas_src>

<mosaic_0001>
module attributes {stable_mosaic.version = 11 : i64} {
  func.func @_textcnn_kernel(%arg0: i32, %arg1: memref<48x128xbf16, #tpu.memory_space<vmem>>, %arg2: memref<16x128xbf16, #tpu.memory_space<vmem>>, %arg3: memref<896x128xbf16, #tpu.memory_space<vmem>>, %arg4: memref<24x128xf32, #tpu.memory_space<vmem>>, %arg5: memref<8x128xf32, #tpu.memory_space<vmem>>, %arg6: memref<2x128xf32, #tpu.memory_space<vmem>>) attributes {dimension_semantics = [#tpu.dimension_semantics<parallel>], iteration_bounds = array<i64: 1>, scalar_prefetch = 0 : i64, scratch_operands = 0 : i64, tpu.core_type = #tpu.core_type<tc>, window_params = [{transform_indices = @transform_0, window_bounds = array<i64: 48, 128>}, {transform_indices = @transform_1, window_bounds = array<i64: 16, 128>}, {pipeline_mode = #tpu.pipeline_mode<synchronous>, transform_indices = @transform_2, window_bounds = array<i64: 896, 128>}, {pipeline_mode = #tpu.pipeline_mode<synchronous>, transform_indices = @transform_3, window_bounds = array<i64: 24, 128>}, {pipeline_mode = #tpu.pipeline_mode<synchronous>, transform_indices = @transform_4, window_bounds = array<i64: 8, 128>}, {transform_indices = @transform_5, window_bounds = array<i64: 2, 128>}]} {
    %c0 = arith.constant 0 : index
    %c0_0 = arith.constant 0 : index
    %0 = vector.load %arg1[%c0, %c0_0] : memref<48x128xbf16, #tpu.memory_space<vmem>>, vector<48x128xbf16>
    %1 = vector.extract_strided_slice %0 {offsets = [1, 0], sizes = [47, 128], strides = [1, 1]} : vector<48x128xbf16> to vector<47x128xbf16>
    %cst = arith.constant 0.000000e+00 : bf16
    %2 = vector.broadcast %cst : bf16 to vector<1x128xbf16>
    %3 = tpu.concatenate %1, %2 in 0 : vector<47x128xbf16>, vector<1x128xbf16> -> vector<48x128xbf16>
    %4 = vector.extract_strided_slice %0 {offsets = [2, 0], sizes = [46, 128], strides = [1, 1]} : vector<48x128xbf16> to vector<46x128xbf16>
    %cst_1 = arith.constant 0.000000e+00 : bf16
    %5 = vector.broadcast %cst_1 : bf16 to vector<2x128xbf16>
    %6 = tpu.concatenate %4, %5 in 0 : vector<46x128xbf16>, vector<2x128xbf16> -> vector<48x128xbf16>
    %7 = vector.extract_strided_slice %0 {offsets = [3, 0], sizes = [45, 128], strides = [1, 1]} : vector<48x128xbf16> to vector<45x128xbf16>
    %cst_2 = arith.constant 0.000000e+00 : bf16
    %8 = vector.broadcast %cst_2 : bf16 to vector<3x128xbf16>
    %9 = tpu.concatenate %7, %8 in 0 : vector<45x128xbf16>, vector<3x128xbf16> -> vector<48x128xbf16>
    %10 = vector.extract_strided_slice %0 {offsets = [4, 0], sizes = [44, 128], strides = [1, 1]} : vector<48x128xbf16> to vector<44x128xbf16>
    %cst_3 = arith.constant 0.000000e+00 : bf16
    %11 = vector.broadcast %cst_3 : bf16 to vector<4x128xbf16>
    %12 = tpu.concatenate %10, %11 in 0 : vector<44x128xbf16>, vector<4x128xbf16> -> vector<48x128xbf16>
    %13 = tpu.concatenate %0, %3 in 1 : vector<48x128xbf16>, vector<48x128xbf16> -> vector<48x256xbf16>
    %14 = tpu.concatenate %6, %9 in 1 : vector<48x128xbf16>, vector<48x128xbf16> -> vector<48x256xbf16>
    %c0_4 = arith.constant 0 : index
    %c0_5 = arith.constant 0 : index
    %15 = vector.load %arg3[%c0_4, %c0_5] : memref<896x128xbf16, #tpu.memory_space<vmem>>, vector<256x128xbf16>
    %c256 = arith.constant 256 : index
    %c0_6 = arith.constant 0 : index
    %16 = vector.load %arg3[%c256, %c0_6] : memref<896x128xbf16, #tpu.memory_space<vmem>>, vector<256x128xbf16>
    %c512 = arith.constant 512 : index
    %c0_7 = arith.constant 0 : index
    %17 = vector.load %arg3[%c512, %c0_7] : memref<896x128xbf16, #tpu.memory_space<vmem>>, vector<128x128xbf16>
    %c640 = arith.constant 640 : index
    %c0_8 = arith.constant 0 : index
    %18 = vector.load %arg3[%c640, %c0_8] : memref<896x128xbf16, #tpu.memory_space<vmem>>, vector<256x128xbf16>
    %cst_9 = arith.constant dense<0.000000e+00> : vector<48x128xf32>
    %19 = tpu.matmul %13, %15, %cst_9 {dimension_numbers = #tpu.dot_dimension_numbers<[1], [0], [0], [1], [0, 0, 1, 1], [], []>} : vector<48x256xbf16>, vector<256x128xbf16>, vector<48x128xf32> -> vector<48x128xf32>
    %cst_10 = arith.constant dense<0.000000e+00> : vector<48x128xf32>
    %20 = tpu.matmul %14, %16, %cst_10 {dimension_numbers = #tpu.dot_dimension_numbers<[1], [0], [0], [1], [0, 0, 1, 1], [], []>} : vector<48x256xbf16>, vector<256x128xbf16>, vector<48x128xf32> -> vector<48x128xf32>
    %21 = arith.addf %19, %20 : vector<48x128xf32>
    %cst_11 = arith.constant dense<0.000000e+00> : vector<48x128xf32>
    %22 = tpu.matmul %12, %17, %cst_11 {dimension_numbers = #tpu.dot_dimension_numbers<[1], [0], [0], [1], [0, 0, 1, 1], [], []>} : vector<48x128xbf16>, vector<128x128xbf16>, vector<48x128xf32> -> vector<48x128xf32>
    %23 = arith.addf %21, %22 : vector<48x128xf32>
    %c0_12 = arith.constant 0 : index
    %c0_13 = arith.constant 0 : index
    %24 = vector.load %arg4[%c0_12, %c0_13] : memref<24x128xf32, #tpu.memory_space<vmem>>, vector<24x128xf32>
    %25 = vector.shape_cast %23 : vector<48x128xf32> to vector<2x24x128xf32>
    %26 = vector.shape_cast %24 : vector<24x128xf32> to vector<1x24x128xf32>
    %27 = vector.broadcast %26 : vector<1x24x128xf32> to vector<2x24x128xf32>
    %28 = arith.addf %25, %27 : vector<2x24x128xf32>
    %cst_14 = arith.constant dense<0xFF800000> : vector<2x128xf32>
    %29 = vector.multi_reduction <maximumf>, %28, %cst_14 [1] : vector<2x24x128xf32> to vector<2x128xf32>
    %c0_15 = arith.constant 0 : index
    %c0_16 = arith.constant 0 : index
    %30 = vector.load %arg5[%c0_15, %c0_16] : memref<8x128xf32, #tpu.memory_space<vmem>>, vector<8x128xf32>
    %31 = vector.extract_strided_slice %30 {offsets = [0, 0], sizes = [1, 128], strides = [1, 1]} : vector<8x128xf32> to vector<1x128xf32>
    %32 = vector.extract_strided_slice %30 {offsets = [1, 0], sizes = [1, 128], strides = [1, 1]} : vector<8x128xf32> to vector<1x128xf32>
    %33 = vector.broadcast %31 : vector<1x128xf32> to vector<2x128xf32>
    %34 = arith.addf %29, %33 : vector<2x128xf32>
    %cst_17 = arith.constant 0.000000e+00 : f32
    %35 = vector.broadcast %cst_17 : f32 to vector<2x128xf32>
    %36 = arith.maximumf %34, %35 : vector<2x128xf32>
    %c0_18 = arith.constant 0 : index
    %c0_19 = arith.constant 0 : index
    %37 = vector.load %arg2[%c0_18, %c0_19] : memref<16x128xbf16, #tpu.memory_space<vmem>>, vector<16x128xbf16>
    %38 = arith.extf %37 : vector<16x128xbf16> to vector<16x128xf32>
    %39 = vector.shape_cast %38 : vector<16x128xf32> to vector<2x8x128xf32>
    %cst_20 = arith.constant dense<0.000000e+00> : vector<2x128xf32>
    %40 = vector.multi_reduction <add>, %39, %cst_20 [1] : vector<2x8x128xf32> to vector<2x128xf32>
    %cst_21 = arith.constant 1.250000e-01 : f32
    %41 = vector.broadcast %cst_21 : f32 to vector<2x128xf32>
    %42 = arith.mulf %40, %41 : vector<2x128xf32>
    %43 = tpu.concatenate %36, %42 in 1 : vector<2x128xf32>, vector<2x128xf32> -> vector<2x256xf32>
    %44 = arith.truncf %43 : vector<2x256xf32> to vector<2x256xbf16>
    %cst_22 = arith.constant dense<0.000000e+00> : vector<2x128xf32>
    %45 = tpu.matmul %44, %18, %cst_22 {dimension_numbers = #tpu.dot_dimension_numbers<[1], [0], [0], [1], [0, 0, 1, 1], [], []>} : vector<2x256xbf16>, vector<256x128xbf16>, vector<2x128xf32> -> vector<2x128xf32>
    %46 = vector.broadcast %32 : vector<1x128xf32> to vector<2x128xf32>
    %47 = arith.addf %46, %45 : vector<2x128xf32>
    %c0_23 = arith.constant 0 : index
    %c0_24 = arith.constant 0 : index
    %48 = vector.load %arg6[%c0_23, %c0_24] : memref<2x128xf32, #tpu.memory_space<vmem>>, vector<2x128xf32>
    tpu.vector_store %arg6[%c0_23, %c0_24], %47 {strides = array<i32>} : memref<2x128xf32, #tpu.memory_space<vmem>>, vector<2x128xf32>,
    return
  }
  func.func @transform_0(%arg0: i32) -> (i32, i32) {
    %c0_i32 = arith.constant 0 : i32
    %c0_i32_0 = arith.constant 0 : i32
    return %arg0, %c0_i32 : i32, i32
  }
  func.func @transform_1(%arg0: i32) -> (i32, i32) {
    %c0_i32 = arith.constant 0 : i32
    %c0_i32_0 = arith.constant 0 : i32
    return %arg0, %c0_i32 : i32, i32
  }
  func.func @transform_2(%arg0: i32) -> (i32, i32) {
    %c0_i32 = arith.constant 0 : i32
    %c0_i32_0 = arith.constant 0 : i32
    %c0_i32_1 = arith.constant 0 : i32
    return %c0_i32, %c0_i32_0 : i32, i32
  }
  func.func @transform_3(%arg0: i32) -> (i32, i32) {
    %c0_i32 = arith.constant 0 : i32
    %c0_i32_0 = arith.constant 0 : i32
    %c0_i32_1 = arith.constant 0 : i32
    return %c0_i32, %c0_i32_0 : i32, i32
  }
  func.func @transform_4(%arg0: i32) -> (i32, i32) {
    %c0_i32 = arith.constant 0 : i32
    %c0_i32_0 = arith.constant 0 : i32
    %c0_i32_1 = arith.constant 0 : i32
    return %c0_i32, %c0_i32_0 : i32, i32
  }
  func.func @transform_5(%arg0: i32) -> (i32, i32) {
    %c0_i32 = arith.constant 0 : i32
    %c0_i32_0 = arith.constant 0 : i32
    return %arg0, %c0_i32 : i32, i32
  }
}

</mosaic_0001>

<bundles_post_ra>
// kernel: tpu_custom_call.1
= control target key start
LH: loop header
LB: loop body
LE: loop exit
PB: predicated region body
PF: predicated region fallthrough
CT: control target
= control target key end

     0   :  { %10 = vsyncpa [#allocation3], 0  ;;  %s1494_s0 = inlined_call_operand.hbm [shape: bf16[48,128], index: 0, kind: input, shape index: {}]   ;;  %s1495_s1 = inlined_call_operand.hbm [shape: bf16[16,128], index: 1, kind: input, shape index: {}]   ;;  %s1496_s2 = inlined_call_operand.hbm [shape: bf16[896,128], index: 2, kind: input, shape index: {}]   ;;  %s1497_s3 = inlined_call_operand.hbm [shape: f32[24,128], index: 3, kind: input, shape index: {}]   ;;  %s1498_s4 = inlined_call_operand.vmem [shape: f32[8,128], index: 4, kind: input, shape index: {}]   ;;  %s1499_s5 = inlined_call_operand.hbm [shape: f32[2,128], index: 5, kind: output, shape index: {}]  }
   0x1   :  { %11 = vsyncpa [#allocation6], 0 }
   0x2   :  { %12 = vsyncpa [#allocation9], 0 }
   0x3   :  { %13 = vsyncpa [#allocation4], 0  ;;  %s1307_s18 = smov [#allocation5]   ;;  %s1308_s20 = smov [#allocation2]  }
   0x4   :  { %s31_s19 = sshll.u32 %s1307_s18, 4  ;;  %s19_s21 = sshll.u32 %s1308_s20, 4  ;;  %s32_s19 = int_to_ptr.vmem [resolvable:$true] %s31_s19  ;;  %s1348_s21 = int_to_ptr.vmem [resolvable:$true] %s19_s21 }
   0x5   :  { %s1189_s24 = scalar_lea.hbm %s1495_s1, 128 }
   0x6   :  { %p1190_p0 = scmp.ne.s32.totalorder %s1495_s1, %s1189_s24  ;;  %p1193_p1 = scmp.lt.u32.totalorder %s1189_s24, %s1495_s1 }
   0x8   :  { %p1195_p2 = pnand %p1193_p1, %p1190_p0 }
   0xa   :  { %1198 = shalt.err (!%p1195_p2)
}
   0xb   :  { %s1199_s29 = scalar_lea.vmem %s32_s19, 128  ;;  %p1204_p4 = scmp.lt.s32.totalorder %s32_s19, %s32_s19 }
   0xc   :  { %p1200_p3 = scmp.ne.s32.totalorder %s32_s19, %s1199_s29  ;;  %p1205_p5 = scmp.lt.s32.totalorder %s1199_s29, %s1199_s29 }
   0xe   :  { %p1206_p6 = por %p1205_p5, %p1204_p4 }
  0x10   :  { %p1207_p7 = pnand %p1206_p6, %p1200_p3 }
  0x12   :  { %1210 = shalt.err (!%p1207_p7)
}
  0x13   :  { %s1309_s30 = smov 64   ;;  %s1310_s6 = smov 4  }
  0x14   :  { %37 = dma.hbm_to_vmem [thread:$0]  %s1495_s1, 128, %s32_s19, [#allocation6], %s1309_s30, %s1309_s30, %s1310_s6  }
  0x15   :  { %s1211_s11 = scalar_lea.hbm %s1494_s0, 384 }
  0x16   :  { %p1212_p8 = scmp.ne.s32.totalorder %s1494_s0, %s1211_s11  ;;  %p1215_p9 = scmp.lt.u32.totalorder %s1211_s11, %s1494_s0 }
  0x18   :  { %p1217_p10 = pnand %p1215_p9, %p1212_p8 }
  0x1a   :  { %1220 = shalt.err (!%p1217_p10)
}
  0x1b   :  { %s1221_s16 = scalar_lea.vmem %s1348_s21, 384  ;;  %p1226_p12 = scmp.lt.s32.totalorder %s1348_s21, %s1348_s21 }
  0x1c   :  { %p1222_p11 = scmp.ne.s32.totalorder %s1348_s21, %s1221_s16  ;;  %p1227_p13 = scmp.lt.s32.totalorder %s1221_s16, %s1221_s16 }
  0x1e   :  { %p1228_p0 = por %p1227_p13, %p1226_p12 }
  0x20   :  { %p1229_p1 = pnand %p1228_p0, %p1222_p11 }
  0x22   :  { %1232 = shalt.err (!%p1229_p1)
}
  0x23   :  { %25 = dma.hbm_to_vmem [thread:$0]  %s1494_s0, 384, %s1348_s21, [#allocation3], %s1309_s30, %s1309_s30, %s1310_s6  }
  0x24   :  { %s1311_s18 = smov [#allocation7]   ;;  %s1312_s20 = smov [#allocation8]  }
  0x25   :  { %s43_s19 = sshll.u32 %s1311_s18, 4  ;;  %s55_s22 = sshll.u32 %s1312_s20, 4  ;;  %s44_s19 = int_to_ptr.vmem [resolvable:$true] %s43_s19  ;;  %s1385_s22 = int_to_ptr.vmem [resolvable:$true] %s55_s22 }
  0x26   :  { %s1233_s25 = scalar_lea.hbm %s1496_s2, 7168 }
  0x27   :  { %p1234_p2 = scmp.ne.s32.totalorder %s1496_s2, %s1233_s25  ;;  %p1237_p3 = scmp.lt.u32.totalorder %s1233_s25, %s1496_s2 }
  0x29   :  { %p1239_p4 = pnand %p1237_p3, %p1234_p2 }
  0x2b   :  { %1242 = shalt.err (!%p1239_p4)
}
  0x2c   :  { %s1243_s0 = scalar_lea.vmem %s44_s19, 7168  ;;  %p1248_p6 = scmp.lt.s32.totalorder %s44_s19, %s44_s19 }
  0x2d   :  { %p1244_p5 = scmp.ne.s32.totalorder %s44_s19, %s1243_s0  ;;  %p1249_p7 = scmp.lt.s32.totalorder %s1243_s0, %s1243_s0 }
  0x2f   :  { %p1250_p8 = por %p1249_p7, %p1248_p6 }
  0x31   :  { %p1251_p9 = pnand %p1250_p8, %p1244_p5 }
  0x33   :  { %1254 = shalt.err (!%p1251_p9)
}
  0x34   :  { %49 = dma.hbm_to_vmem [thread:$0]  %s1496_s2, 7168, %s44_s19, [#allocation6], %s1309_s30, %s1309_s30, %s1310_s6  }
  0x35   :  { %s1255_s10 = scalar_lea.hbm %s1497_s3, 384 }
  0x36   :  { %p1256_p10 = scmp.ne.s32.totalorder %s1497_s3, %s1255_s10  ;;  %p1259_p11 = scmp.lt.u32.totalorder %s1255_s10, %s1497_s3 }
  0x38   :  { %p1261_p12 = pnand %p1259_p11, %p1256_p10 }
  0x3a   :  { %1264 = shalt.err (!%p1261_p12)
}
  0x3b   :  { %s1265_s15 = scalar_lea.vmem %s1385_s22, 384  ;;  %p1270_p0 = scmp.lt.s32.totalorder %s1385_s22, %s1385_s22 }
  0x3c   :  { %p1266_p13 = scmp.ne.s32.totalorder %s1385_s22, %s1265_s15  ;;  %p1271_p1 = scmp.lt.s32.totalorder %s1265_s15, %s1265_s15 }
  0x3e   :  { %p1272_p2 = por %p1271_p1, %p1270_p0 }
  0x40   :  { %p1273_p3 = pnand %p1272_p2, %p1266_p13 }
  0x42   :  { %1276 = shalt.err (!%p1273_p3)
}
  0x43   :  { %s1313_s2 = smov 128   ;;  %s1314_s30 = smov 8  }
  0x44   :  { %61 = dma.hbm_to_vmem [thread:$0]  %s1497_s3, 384, %s1385_s22, [#allocation9], %s1313_s2, %s1313_s2, %s1314_s30  }
  0x45   :  { %1299 = dma.done.wait [#allocation3], 384  }
  0x46   :  { %1300 = vsyncadd [#allocation3], 4294966912 }
  0x47   :  { %1301 = dma.done.wait [#allocation6], 7296  }
  0x48   :  { %1302 = vsyncadd [#allocation6], 4294960000 }
  0x49   :  { %1303 = dma.done.wait [#allocation9], 384  }
  0x4a   :  { %1304 = vsyncadd [#allocation9], 4294966912  ;;  %v1130_v0 = vld [vmem:[#allocation7 + $0xc0] sm:$0xff]   ;;  %v1134_v4 = vld [vmem:[#allocation7 + $0xc8] sm:$0xff]   ;;  %vm141_vm0 = vsmask.f32 6400 }
  0x4b   :  { %v1131_v1 = vld [vmem:[#allocation7 + $0x40] sm:$0xff]   ;;  %990 = vmatprep.subr.bf16.mxu0 %v1130_v0  ;;  %v1135_v5 = vld [vmem:[#allocation7 + $0x48] sm:$0xff]   ;;  %v1138_v8 = vld [vmem:[#allocation7 + $0xd0] sm:$0xff]   ;;  %v1315_v34 = vmov 0.0   ;;  %vm98_vm1 = vsmask.f32 7424 }
  0x4c   :  { %v1132_v2 = vld [vmem:[#allocation7 + $0x80] sm:$0xff]   ;;  %1024 = vmatprep.subr.bf16.mxu1 %v1131_v1  ;;  %v1136_v6 = vld [vmem:[#allocation7 + $0x88] sm:$0xff]   ;;  %v1139_v9 = vld [vmem:[#allocation7 + $0x50] sm:$0xff]   ;;  %vm128_vm2 = vcmask 1046528   ;;  %vm125_vm3 = vcmask 1047552   ;;  %vm1316_vm6 = vmmov 0  }
  0x4d   :  { %v1133_v3 = vld [vmem:[#allocation7] sm:$0xff]   ;;  %991 = vmatpush3.bf16.msra.mxu0 %v1132_v2  ;;  %v1137_v7 = vld [vmem:[#allocation7 + $0x8] sm:$0xff]   ;;  %v1140_v10 = vld [vmem:[#allocation7 + $0x90] sm:$0xff]   ;;  %vm158_vm7 = vcmask 1045504   ;;  %vm757_vm8 = vcmask 1041409   ;;  %s1317_s17 = smov [#allocation10]  }
  0x4e   :  { %1025 = vmatpush3.bf16.msra.mxu1 %v1133_v3  ;;  %992 = vmatprep.subr.bf16.mxu0 %v1134_v4  ;;  %v1141_v11 = vld [vmem:[#allocation7 + $0x10] sm:$0xff]   ;;  %v1142_v12 = vld [vmem:[#allocation7 + $0xd8] sm:$0xff]   ;;  %v1146_v16 = vld [vmem:[#allocation7 + $0xe0] sm:$0xff]  }
  0x4f   :  { %1026 = vmatprep.subr.bf16.mxu1 %v1135_v5  ;;  %v1143_v13 = vld [vmem:[#allocation7 + $0x58] sm:$0xff]   ;;  %v1147_v17 = vld [vmem:[#allocation7 + $0x60] sm:$0xff]   ;;  %v1150_v20 = vld [vmem:[#allocation7 + $0xe8] sm:$0xff]  }
  0x50   :  { %v1144_v14 = vld [vmem:[#allocation7 + $0x98] sm:$0xff]   ;;  %v1148_v18 = vld [vmem:[#allocation7 + $0xa0] sm:$0xff]   ;;  %v1151_v21 = vld [vmem:[#allocation7 + $0x68] sm:$0xff]  }
  0x51   :  { %993 = vmatpush3.bf16.msra.mxu0 %v1136_v6  ;;  %v1145_v15 = vld [vmem:[#allocation7 + $0x18] sm:$0xff]   ;;  %v1149_v19 = vld [vmem:[#allocation7 + $0x20] sm:$0xff]   ;;  %v1152_v22 = vld [vmem:[#allocation7 + $0xa8] sm:$0xff]  }
  0x52   :  { %1027 = vmatpush3.bf16.msra.mxu1 %v1137_v7  ;;  %994 = vmatprep.subr.bf16.mxu0 %v1138_v8  ;;  %v1153_v23 = vld [vmem:[#allocation7 + $0x28] sm:$0xff]   ;;  %v1154_v24 = vld [vmem:[#allocation7 + $0xf0] sm:$0xff]   ;;  %v1158_v28 = vld [vmem:[#allocation7 + $0xf8] sm:$0xff]  }
  0x53   :  { %1028 = vmatprep.subr.bf16.mxu1 %v1139_v9  ;;  %v1155_v25 = vld [vmem:[#allocation7 + $0x70] sm:$0xff]   ;;  %v1159_v29 = vld [vmem:[#allocation7 + $0x78] sm:$0xff]   ;;  %v1419_v32 = vld [vmem:[#allocation2] sm:$0xff]  }
  0x54   :  { %v1156_v26 = vld [vmem:[#allocation7 + $0xb0] sm:$0xff]   ;;  %v1160_v30 = vld [vmem:[#allocation7 + $0xb8] sm:$0xff]   ;;  %v1421_v33 = vld [vmem:[#allocation2 + $0x8] sm:$0xff]   ;;  %v100_v35 = vshrl.u32 %v1419_v32, 16  ;;  %v102_v36 = vshll.u32 %v1419_v32, 16  ;;  %v129_v39 = vrot.slane %v1419_v32, 1 }
  0x55   :  { %995 = vmatpush3.bf16.msra.mxu0 %v1140_v10  ;;  %v1157_v27 = vld [vmem:[#allocation7 + $0x30] sm:$0xff]   ;;  %v1161_v31 = vld [vmem:[#allocation7 + $0x38] sm:$0xff]   ;;  %v107_v37 = vshll.u32 %v1421_v33, 16  ;;  %v111_v38 = vshrl.u32 %v1421_v33, 16  ;;  %v130_v40 = vrot.slane %v1421_v33, 1  ;;  %v1164_v52 = vld [vmem:[#allocation7 + $0x100] sm:$0xff]  }
  0x56   :  { %1029 = vmatpush3.bf16.msra.mxu1 %v1141_v11  ;;  %996 = vmatprep.subr.bf16.mxu0 %v1142_v12  ;;  %v142_v41 = vrot.slane %v100_v35, 1  ;;  %v143_v42 = vrot.slane %v102_v36, 2  ;;  %v104_v45 = vrot.slane %v102_v36, 1  ;;  %v1430_v49 = vld [vmem:[#allocation2 + $0x10] sm:$0xff]   ;;  %vm1438_vm4 = vmand %vm128_vm2, %vm141_vm0  ;;  %v1165_v59 = vld [vmem:[#allocation7 + $0x108] sm:$0xff]  }
  0x57   :  { %1030 = vmatprep.subr.bf16.mxu1 %v1143_v13  ;;  %v145_v43 = vrot.slane %v111_v38, 1  ;;  %v146_v44 = vrot.slane %v107_v37, 2  ;;  %v109_v46 = vrot.slane %v107_v37, 1  ;;  %v131_v51 = vsel %vm128_vm2, %v129_v39, %v130_v40  ;;  %vm1446_vm5 = vmand %vm125_vm3, %vm98_vm1  ;;  %v1166_v4 = vld [vmem:[#allocation7 + $0x110] sm:$0xff]   ;;  %v1168_v9 = vld [vmem:[#allocation7 + $0x118] sm:$0xff]  }
  0x58   :  { %v144_v47 = vor.u32 %v143_v42, %v142_v41  ;;  %v105_v50 = vor.u32 %v104_v45, %v100_v35  ;;  %v115_v54 = vshll.u32 %v1430_v49, 16  ;;  %v119_v55 = vshrl.u32 %v1430_v49, 16  ;;  %v1169_v10 = vld [vmem:[#allocation7 + $0x120] sm:$0xff]   ;;  %v1170_v11 = vld [vmem:[#allocation7 + $0x128] sm:$0xff]   ;;  %v1171_v12 = vld [vmem:[#allocation7 + $0x130] sm:$0xff]  }
  0x59   :  { %997 = vmatpush3.bf16.msra.mxu0 %v1144_v14  ;;  %v147_v48 = vor.u32 %v146_v44, %v145_v43  ;;  %v113_v56 = vor.u32 %v111_v38, %v109_v46  ;;  %v132_v63 = vrot.slane %v1430_v49, 1  ;;  %v1172_v13 = vld [vmem:[#allocation7 + $0x138] sm:$0xff]   ;;  %v159_v14 = vrot.slane %v1419_v32, 2  ;;  %v1183_v36 = vld [vmem:[#allocation7 + $0x1a8] sm:$0xff]   ;;  %v1186_v43 = vld [vmem:[#allocation7 + $0x170] sm:$0xff]  }
  0x5a   :  { %1031 = vmatpush3.bf16.msra.mxu1 %v1145_v15  ;;  %998 = vmatprep.subr.bf16.mxu0 %v1146_v16  ;;  %v110_v58 = vsel %vm98_vm1, %v105_v50, %v109_v46  ;;  %v149_v60 = vrot.slane %v119_v55, 1  ;;  %v150_v61 = vrot.slane %v115_v54, 2  ;;  %v117_v62 = vrot.slane %v115_v54, 1  ;;  %v1184_v39 = vld [vmem:[#allocation7 + $0x168] sm:$0xff]   ;;  %v1187_v44 = vld [vmem:[#allocation7 + $0x1b8] sm:$0xff]  }
  0x5b   :  { %1032 = vmatprep.subr.bf16.mxu1 %v1147_v17  ;;  %v148_v53 = vsel %vm141_vm0, %v144_v47, %v147_v48  ;;  %566 = vmatprep.mubr.bf16.mxu1 %v110_v58  ;;  %v133_v8 = vsel %vm128_vm2, %v130_v40, %v132_v63  ;;  %v160_v15 = vrot.slane %v1421_v33, 2  ;;  %v162_v17 = vrot.slane %v1430_v49, 2  ;;  %v1185_v40 = vld [vmem:[#allocation7 + $0x1b0] sm:$0xff]  }
  0x5c   :  { %413 = vmatprep.mubr.bf16.mxu0 %v148_v53  ;;  %v151_v1 = vor.u32 %v150_v61, %v149_v60  ;;  %v118_v2 = vsel %vm98_vm1, %v113_v56, %v117_v62  ;;  %v121_v3 = vor.u32 %v119_v55, %v117_v62 }
  0x5d   :  { %999 = vmatpush3.bf16.msra.mxu0 %v1148_v18  ;;  %v161_v16 = vsel %vm158_vm7, %v159_v14, %v160_v15  ;;  %v163_v18 = vsel %vm158_vm7, %v160_v15, %v162_v17 }
  0x5e   :  { %1033 = vmatpush3.bf16.msra.mxu1 %v1149_v19  ;;  %1000 = vmatprep.subr.bf16.mxu0 %v1150_v20  ;;  %v152_v5 = vsel %vm141_vm0, %v147_v48, %v151_v1  ;;  %v157_v6 = vsel %vm1438_vm4, %v151_v1, 0  ;;  %v127_v7 = vsel %vm1446_vm5, %v121_v3, 0  ;;  %v1173_v19 = vld [vmem:[#allocation7 + $0x180] sm:$0xff]  }
  0x5f   :  { %1034 = vmatprep.subr.bf16.mxu1 %v1151_v21  ;;  %v1174_v20 = vld [vmem:[#allocation7 + $0x140] sm:$0xff]   ;;  %v1175_v21 = vld [vmem:[#allocation7 + $0x188] sm:$0xff]  }
  0x61   :  { %1001 = vmatpush3.bf16.msra.mxu0 %v1152_v22  ;;  %v1176_v22 = vld [vmem:[#allocation7 + $0x148] sm:$0xff]  }
  0x62   :  { %1035 = vmatpush3.bf16.msra.mxu1 %v1153_v23  ;;  %1002 = vmatprep.subr.bf16.mxu0 %v1154_v24  ;;  %v1177_v23 = vld [vmem:[#allocation7 + $0x190] sm:$0xff]  }
  0x63   :  { %1036 = vmatprep.subr.bf16.mxu1 %v1155_v25  ;;  %v1178_v24 = vld [vmem:[#allocation7 + $0x150] sm:$0xff]   ;;  %v1179_v25 = vld [vmem:[#allocation7 + $0x198] sm:$0xff]  }
  0x65   :  { %1003 = vmatpush3.bf16.msra.mxu0 %v1156_v26  ;;  %v1180_v26 = vld [vmem:[#allocation7 + $0x158] sm:$0xff]  }
  0x66   :  { %1037 = vmatpush3.bf16.msra.mxu1 %v1157_v27  ;;  %1004 = vmatprep.subr.bf16.mxu0 %v1158_v28  ;;  %v987_v27 = vld [vmem:[#allocation5] sm:$0xff]  }
  0x67   :  { %1038 = vmatprep.subr.bf16.mxu1 %v1159_v29  ;;  %v988_v28 = vunpack.c.l.bf16 %v987_v27  ;;  %v989_v29 = vunpack.c.h.bf16 %v987_v27 }
  0x69   :  { %1005 = vmatpush3.bf16.msra.mxu0 %v1160_v30  ;;  %v1181_v30 = vld [vmem:[#allocation7 + $0x1a0] sm:$0xff]  }
  0x6a   :  { %1039 = vmatpush3.bf16.msra.mxu1 %v1161_v31  ;;  %1091 = vmatprep.subr.bf16.mxu0 %v1315_v34  ;;  %v740_v31 = vrot.slane %v988_v28, 4 }
  0x6b   :  { %1069 = vmatprep.subr.bf16.mxu1 %v1173_v19 }
  0x6c   :  { %414 = vmatmul.mubr.bf16.vlgmr.msra.gmra.mrb[0].mxu0 %v131_v51 }
  0x6d   :  { %567 = vmatmul.mubr.bf16.vlgmr.msra.gmra.mrb[0].mxu1 %v1419_v32  ;;  %1092 = vmatpush3.bf16.msra.mxu0 %v1164_v52  ;;  %v746_v32 = vrot.slane %v989_v29, 4 }
  0x6e   :  { %1093 = vmatprep.subr.bf16.mxu0 %v1315_v34  ;;  %574 = vmatprep.mubr.bf16.mxu1 %v118_v2 }
  0x6f   :  { %421 = vmatprep.mubr.bf16.mxu0 %v152_v5  ;;  %1070 = vmatpush3.bf16.msra.mxu1 %v1174_v20  ;;  %v747_v35 = vadd.f32 %v989_v29, %v746_v32 }
  0x70   :  { %1071 = vmatprep.subr.bf16.mxu1 %v1175_v21 }
  0x71   :  { %1094 = vmatpush3.bf16.msra.mxu0 %v1165_v59  ;;  %v748_v38 = vrot.slane %v747_v35, 2 }
  0x72   :  { %1095 = vmatprep.subr.bf16.mxu0 %v1315_v34 }
  0x73   :  { %1072 = vmatpush3.bf16.msra.mxu1 %v1176_v22  ;;  %v749_v42 = vadd.f32 %v748_v38, %v747_v35  ;;  %v702_v38 = vld [vmem:[#allocation8] sm:$0xff] }
  0x74   :  { %422 = vmatmul.mubr.bf16.gmra.mrb[4].mxu0 %v133_v8  ;;  %1073 = vmatprep.subr.bf16.mxu1 %v1177_v23 }
  0x75   :  { %1096 = vmatpush3.bf16.msra.mxu0 %v1166_v4  ;;  %575 = vmatmul.mubr.bf16.gmra.mrb[4].mxu1 %v1421_v33  ;;  %v1182_v33 = vld [vmem:[#allocation7 + $0x160] sm:$0xff]   ;;  %v750_v46 = vrot.slane %v749_v42, 1 }
  0x76   :  { %1097 = vmatprep.subr.bf16.mxu0 %v1315_v34  ;;  %429 = vmatprep.mubr.bf16.mxu0 %v157_v6 }
  0x77   :  { %582 = vmatprep.mubr.bf16.mxu1 %v127_v7  ;;  %1074 = vmatpush3.bf16.msra.mxu1 %v1178_v24  ;;  %v751_v48 = vadd.f32 %v750_v46, %v749_v42 }
  0x78   :  { %1075 = vmatprep.subr.bf16.mxu1 %v1179_v25 }
  0x79   :  { %1098 = vmatpush3.bf16.msra.mxu0 %v1168_v9  ;;  %v753_v51 = vmul.f32 0.125, %v751_v48 }
  0x7a   :  { %1099 = vmatprep.subr.bf16.mxu0 %v1315_v34 }
  0x7b   :  { %1076 = vmatpush3.bf16.msra.mxu1 %v1180_v26 }
  0x7c   :  { %944 = vmatmul.mubr.msk.bf16.gmra.mrb[8].mxu0 %vm128_vm2, %v132_v63  ;;  %1077 = vmatprep.subr.bf16.mxu1 %v1181_v30 }
  0x7d   :  { %1100 = vmatpush3.bf16.msra.mxu0 %v1169_v10  ;;  %583 = vmatmul.mubr.bf16.gmra.mrb[8].mxu1 %v1430_v49  ;;  %v1188_v49 = vld [vmem:[#allocation7 + $0x178] sm:$0xff]  }
  0x7e   :  { %1101 = vmatprep.subr.bf16.mxu0 %v1315_v34  ;;  %1107 = vmatprep.mubr.msk.bf16.mxu0 %vm1316_vm6, %v1315_v34 }
  0x7f   :  { %1078 = vmatpush3.bf16.msra.mxu1 %v1182_v33 }
  0x80   :  { %1079 = vmatprep.subr.bf16.mxu1 %v1183_v36 }
  0x81   :  { %1102 = vmatpush3.bf16.msra.mxu0 %v1170_v11 }
  0x82   :  { %1103 = vmatprep.subr.bf16.mxu0 %v1315_v34 }
  0x83   :  { %1080 = vmatpush3.bf16.msra.mxu1 %v1184_v39 }
  0x84   :  { %1081 = vmatprep.subr.bf16.mxu1 %v1185_v40  ;;  %v704_v40 = vld [vmem:[#allocation8 + $0x10] sm:$0xff] }
  0x85   :  { %1104 = vmatpush3.bf16.msra.mxu0 %v1171_v12 }
  0x86   :  { %1105 = vmatprep.subr.bf16.mxu0 %v1315_v34 }
  0x87   :  { %1082 = vmatpush3.bf16.msra.mxu1 %v1186_v43  ;;  %v703_v43 = vld [vmem:[#allocation8 + $0x8] sm:$0xff] }
  0x88   :  { %1083 = vmatprep.subr.bf16.mxu1 %v1187_v44 }
  0x89   :  { %1106 = vmatpush3.bf16.msra.mxu0 %v1172_v13 }
  0x8b   :  { %1084 = vmatpush3.bf16.msra.mxu1 %v1188_v49 }
  0x8c   :  { %1108 = vmatmul.mubr.bf16.vlgmr.msra.gmra.mrb[12].mxu0 %v161_v16 }
  0x8d   :  { %1111 = vmatprep.mubr.msk.bf16.mxu0 %vm1316_vm6, %v1315_v34 }
  0x94   :  { %1112 = vmatmul.mubr.bf16.gmra.mrb[16].mxu0 %v163_v18 }
  0x95   :  { %1115 = vmatprep.mubr.msk.bf16.mxu0 %vm1316_vm6, %v1315_v34  ;;  %v741_v34 = vadd.f32 %v988_v28, %v740_v31 }
  0x97   :  { %v742_v37 = vrot.slane %v741_v34, 2 }
  0x99   :  { %v743_v41 = vadd.f32 %v742_v37, %v741_v34 }
  0x9b   :  { %v744_v45 = vrot.slane %v743_v41, 1 }
  0x9c   :  { %1116 = vmatmul.mubr.msk.bf16.gmra.mrb[20].mxu0 %vm158_vm7, %v162_v17 }
  0x9d   :  { %v745_v47 = vadd.f32 %v744_v45, %v743_v41 }
  0x9f   :  { %v752_v50 = vmul.f32 0.125, %v745_v47 }
  0xa1   :  { %v762_v52 = vsel %vm757_vm8, %v753_v51, %v752_v50 }
  0xa2   :  { %v765_v53 = vpack.c.bf16 %v762_v52, %v762_v52 }
  0xa4   :  { %894 = vmatprep.mubr.bf16.mxu1 %v765_v53 }
 0x13f   :  { %v1006_v54 = vpop.f32.mrb[0].mxu0 }
 0x140   :  { %v1040_v55 = vpop.f32.mrb[0].mxu1  ;;  %v1007_v56 = vpop.f32.mrb[1].mxu0 }
 0x141   :  { %v1008_v57 = vadd.f32 %v1007_v56, %v1006_v54  ;;  %v1041_v58 = vpop.f32.mrb[1].mxu1  ;;  %v1009_v59 = vpop.f32.mrb[2].mxu0 }
 0x142   :  { %v1042_v60 = vadd.f32 %v1041_v58, %v1040_v55  ;;  %v1043_v61 = vpop.f32.mrb[2].mxu1  ;;  %v1010_v62 = vpop.f32.mrb[3].mxu0 }
 0x143   :  { %v1011_v63 = vadd.f32 %v1010_v62, %v1009_v59  ;;  %v1044_v0 = vpop.f32.mrb[3].mxu1 }
 0x144   :  { %v1045_v1 = vadd.f32 %v1044_v0, %v1043_v61  ;;  %v569_v2 = vadd.f32 %v1042_v60, %v1008_v57 }
 0x146   :  { %v572_v3 = vadd.f32 %v1045_v1, %v1011_v63  ;;  %v728_v1 = vlaneseq }
 0x147   :  { %v1012_v4 = vpop.f32.mrb[4].mxu0 }
 0x148   :  { %v1046_v5 = vpop.f32.mrb[4].mxu1  ;;  %v1013_v6 = vpop.f32.mrb[5].mxu0 }
 0x149   :  { %v1014_v7 = vadd.f32 %v1013_v6, %v1012_v4  ;;  %v1047_v8 = vpop.f32.mrb[5].mxu1  ;;  %v1015_v9 = vpop.f32.mrb[6].mxu0 }
 0x14a   :  { %v1048_v10 = vadd.f32 %v1047_v8, %v1046_v5  ;;  %v1049_v11 = vpop.f32.mrb[6].mxu1  ;;  %v1016_v12 = vpop.f32.mrb[7].mxu0  ;;  %v729_v5 = vshrl.u32 %v728_v1, 7 }
 0x14b   :  { %v1017_v13 = vadd.f32 %v1016_v12, %v1015_v9  ;;  %v1050_v14 = vpop.f32.mrb[7].mxu1 }
 0x14c   :  { %v1051_v15 = vadd.f32 %v1050_v14, %v1049_v11  ;;  %v577_v16 = vadd.f32 %v1048_v10, %v1014_v7  ;;  %v730_v9 = vsub.s32 0, %v729_v5  ;;  %v727_v10 = vld [vmem:[%s1498_s4] sm:$0xff]  ;;  %s914_s4 = sshll.u32 %s1317_s17, 4  ;;  %s915_s4 = int_to_ptr.vmem [resolvable:$true] %s914_s4 }
 0x14d   :  { %s1277_s18 = scalar_lea.vmem %s915_s4, 32  ;;  %p1282_p5 = scmp.lt.s32.totalorder %s915_s4, %s915_s4 }
 0x14e   :  { %v580_v17 = vadd.f32 %v1051_v15, %v1017_v13  ;;  %v731_v14 = vrot.slane %v727_v10, %v730_v9  ;;  %p1278_p4 = scmp.ne.s32.totalorder %s915_s4, %s1277_s18  ;;  %p1283_p6 = scmp.lt.s32.totalorder %s1277_s18, %s1277_s18 }
 0x14f   :  { %v1018_v18 = vpop.f32.mrb[8].mxu0 }
 0x150   :  { %v1052_v19 = vpop.f32.mrb[8].mxu1  ;;  %v1019_v20 = vpop.f32.mrb[9].mxu0  ;;  %p1284_p7 = por %p1283_p6, %p1282_p5 }
 0x151   :  { %v1020_v21 = vadd.f32 %v1019_v20, %v1018_v18  ;;  %v1053_v22 = vpop.f32.mrb[9].mxu1  ;;  %v1021_v23 = vpop.f32.mrb[10].mxu0 }
 0x152   :  { %v1054_v24 = vadd.f32 %v1053_v22, %v1052_v19  ;;  %v1055_v25 = vpop.f32.mrb[10].mxu1  ;;  %v1022_v26 = vpop.f32.mrb[11].mxu0  ;;  %p1285_p8 = pnand %p1284_p7, %p1278_p4 }
 0x153   :  { %v1023_v27 = vadd.f32 %v1022_v26, %v1021_v23  ;;  %v1056_v28 = vpop.f32.mrb[11].mxu1  ;;  %v904_v23 = vsub.s32 1, %v729_v5 }
 0x154   :  { %v1057_v29 = vadd.f32 %v1056_v28, %v1055_v25  ;;  %v585_v30 = vadd.f32 %v1054_v24, %v1020_v21 }
 0x155   :  { %v905_v25 = vrot.slane %v727_v10, %v904_v23 }
 0x156   :  { %v588_v31 = vadd.f32 %v1057_v29, %v1023_v27 }
 0x15f   :  { %v673_v32 = vpop.f32.mrb[12].mxu0 }
 0x160   :  { %v696_v33 = vadd.f32 %v673_v32, %v569_v2  ;;  %v1109_v34 = vpop.f32.mrb[13].mxu0 }
 0x161   :  { %v676_v35 = vpop.f32.mrb[14].mxu0 }
 0x162   :  { %v697_v36 = vadd.f32 %v676_v35, %v572_v3  ;;  %v1110_v37 = vpop.f32.mrb[15].mxu0  ;;  %v705_v45 = vadd.f32 %v702_v38, %v696_v33 }
 0x164   :  { %v706_v49 = vadd.f32 %v703_v43, %v697_v36 }
 0x167   :  { %v681_v39 = vpop.f32.mrb[16].mxu0 }
 0x168   :  { %v698_v41 = vadd.f32 %v681_v39, %v577_v16  ;;  %v1113_v42 = vpop.f32.mrb[17].mxu0 }
 0x169   :  { %v684_v44 = vpop.f32.mrb[18].mxu0 }
 0x16a   :  { %v707_v46 = vadd.f32 %v704_v40, %v698_v41  ;;  %v699_v47 = vadd.f32 %v684_v44, %v580_v17  ;;  %v1114_v48 = vpop.f32.mrb[19].mxu0 }
 0x16c   :  { %v711_v50 = vmax.f32 %v705_v45, %v707_v46  ;;  %v708_v60 = vadd.f32 %v702_v38, %v699_v47 }
 0x16e   :  { %v712_v51 = vmax.f32 %v711_v50, %v706_v49 }
 0x16f   :  { %v689_v52 = vpop.f32.mrb[20].mxu0 }
 0x170   :  { %v713_v53 = vrot.slane %v712_v51, 4  ;;  %v700_v54 = vadd.f32 %v689_v52, %v585_v30  ;;  %v1117_v55 = vpop.f32.mrb[21].mxu0 }
 0x171   :  { %v692_v56 = vpop.f32.mrb[22].mxu0 }
 0x172   :  { %v714_v57 = vmax.f32 %v712_v51, %v713_v53  ;;  %v701_v58 = vadd.f32 %v692_v56, %v588_v31  ;;  %v1118_v59 = vpop.f32.mrb[23].mxu0  ;;  %v709_v63 = vadd.f32 %v703_v43, %v700_v54 }
 0x174   :  { %v710_v61 = vadd.f32 %v704_v40, %v701_v58  ;;  %v715_v62 = vrot.slane %v714_v57, 2 }
 0x176   :  { %v719_v0 = vmax.f32 %v708_v60, %v710_v61  ;;  %v716_v3 = vmax.f32 %v714_v57, %v715_v62 }
 0x178   :  { %v720_v2 = vmax.f32 %v719_v0, %v709_v63  ;;  %v717_v7 = vrot.slane %v716_v3, 1 }
 0x17a   :  { %v721_v4 = vrot.slane %v720_v2, 4  ;;  %v718_v12 = vmax.f32 %v716_v3, %v717_v7 }
 0x17c   :  { %v722_v6 = vmax.f32 %v720_v2, %v721_v4  ;;  %v732_v16 = vadd.f32 %v731_v14, %v718_v12 }
 0x17e   :  { %v723_v8 = vrot.slane %v722_v6, 2  ;;  %v734_v19 = vmax.f32 %v732_v16, 0.0 }
 0x180   :  { %v724_v11 = vmax.f32 %v722_v6, %v723_v8 }
 0x182   :  { %v725_v13 = vrot.slane %v724_v11, 1 }
 0x184   :  { %v726_v15 = vmax.f32 %v724_v11, %v725_v13 }
 0x186   :  { %v733_v17 = vadd.f32 %v731_v14, %v726_v15 }
 0x188   :  { %v735_v18 = vmax.f32 %v733_v17, 0.0 }
 0x18a   :  { %v756_v20 = vrot.slane %v735_v18, 7 }
 0x18c   :  { %v758_v21 = vsel %vm757_vm8, %v756_v20, %v734_v19 }
 0x18d   :  { %v764_v22 = vpack.c.bf16 %v758_v21, %v758_v21 }
 0x18f   :  { %895 = vmatmul.mubr.bf16.vlgmr.msra.gmra.mrb[12].mxu1 %v764_v22 }
 0x262   :  { %v1085_v24 = vpop.f32.mrb[12].mxu1 }
 0x263   :  { %v1086_v26 = vpop.f32.mrb[13].mxu1 }
 0x264   :  { %v1087_v27 = vadd.f32 %v1086_v26, %v1085_v24  ;;  %v1088_v28 = vpop.f32.mrb[14].mxu1 }
 0x265   :  { %v1089_v29 = vpop.f32.mrb[15].mxu1 }
 0x266   :  { %v906_v30 = vadd.f32 %v1087_v27, %v905_v25 }
 0x268   :  { %907 = vst [vmem:[#allocation10] sm:$0x3] %v906_v30 }
 0x269   :  { %1288 = shalt.err (!%p1285_p8)
}
 0x26a   :  { %s1289_s22 = scalar_lea.hbm %s1499_s5, 32 }
 0x26b   :  { %p1290_p9 = scmp.ne.s32.totalorder %s1499_s5, %s1289_s22  ;;  %p1293_p10 = scmp.lt.u32.totalorder %s1289_s22, %s1499_s5 }
 0x26d   :  { %p1295_p11 = pnand %p1293_p10, %p1290_p9 }
 0x26f   :  { %1298 = shalt.err (!%p1295_p11)
}
 0x270   :  { %917 = dma.vmem_to_hbm [thread:$0]  %s915_s4, 32, %s1499_s5, [#allocation4]  }
 0x271   :  { %1305 = dma.done.wait [#allocation4], 32  }
 0x272   :  { %1306 = vsyncadd [#allocation4], 4294967264 }
 0x273   :  { %921 = vsyncpa [#allocation3], 1 }
 0x274   :  { %922 = vsyncpa [#allocation6], 1 }
 0x275   :  { %923 = vsyncpa [#allocation9], 1 }
 0x276   :  { %924 = vsyncpa [#allocation4], 1 }

</bundles_post_ra>
